<compile_context>
chip_gen: v5e
topology: v5e:2x2
jax: 0.10.0
libtpu: 0.0.40
codegen_flags: <defaults>
</compile_context>

<pallas_src>
from functools import partial

import jax
import jax.numpy as jnp
import numpy as np
from jax.experimental import pallas as pl
from jax.experimental.pallas import tpu as pltpu


def _round_up(v, m):
    return ((v + m - 1) // m) * m


def _downsample_kernel(ee_ref, eo_ref, oe_ref, oo_ref, o_ref, *, a0, a1, a2):
    """One grid step processes LB planes (planes live on the LANE axis).

    Block shapes (LB = lanes, multiple of 128; W-ish dims padded to sublane tile):
      ee_ref : (1, Ho+1, Wep, LB)   xp[2i,   2k  ]  (even rows / even cols of padded plane)
      eo_ref : (1, Ho+1, Wop, LB)   xp[2i,   2k+1]
      oe_ref : (1, Ho,   Wep, LB)   xp[2i+1, 2k  ]
      oo_ref : (1, Ho,   Wop, LB)   xp[2i+1, 2k+1]
      o_ref  : (1, Ho, Wo_pad, LB)
    Separable Hanning: out = H-pass(a) o V-pass(a) o square.
    """
    Ho, Wo_pad = o_ref.shape[1], o_ref.shape[2]
    f32 = jnp.float32

    # square each padded input element exactly once (folded into the vertical pass inputs)
    ee = ee_ref[0].astype(f32)
    ee = ee * ee
    eo = eo_ref[0].astype(f32)
    eo = eo * eo
    oe = oe_ref[0].astype(f32)
    oe = oe * oe
    oo = oo_ref[0].astype(f32)
    oo = oo * oo

    # vertical 3-tap pass (row stride-2 is encoded by the parity split -> only unit-offset
    # slices along the leading dim here; pure VPU work)
    te = a0 * ee[0:Ho] + a1 * oe + a2 * ee[1:Ho + 1]        # (Ho, Wep, LB)  even columns
    to = a0 * eo[0:Ho] + a1 * oo + a2 * eo[1:Ho + 1]        # (Ho, Wop, LB)  odd  columns

    # horizontal 3-tap pass (column stride-2 encoded by the even/odd column split)
    acc = a0 * te[:, 0:Wo_pad] + a1 * to[:, 0:Wo_pad] + a2 * te[:, 1:Wo_pad + 1]

    o_ref[0] = jnp.sqrt(acc + 1e-12).astype(o_ref.dtype)


def _plan(P, per_lane_bytes):
    """Pick LB (lanes per grid step, multiple of 128), padded plane count and grid length."""
    # ---- chip-aware VMEM budget -------------------------------------------------
    vmem_phys = 128 << 20
    two_cores = False
    try:
        info = pltpu.get_tpu_info()
        vmem_phys = int(getattr(info, "vmem_capacity_bytes", vmem_phys))
    except Exception:
        pass
    try:
        kind = jax.devices()[0].device_kind.lower()
        if "v7" in kind or "7x" in kind:
            two_cores = True
            vmem_phys = min(vmem_phys, 64 << 20)
    except Exception:
        pass

    if two_cores or vmem_phys <= (64 << 20):        # v7x-class: 64 MiB per TC, 2 TCs
        budget, vmem_limit, two_cores = 24 << 20, 48 << 20, True
    else:                                           # v5e / v6e: 128 MiB, single TC
        budget, vmem_limit = 56 << 20, 100 << 20

    # ---- lane block size ---------------------------------------------------------
    p_up = _round_up(P, 128)
    cap = (budget // max(per_lane_bytes, 1)) // 128 * 128
    cap = max(128, min(cap, 512, p_up))

    # enough grid steps to pipeline (NB >= 4) when there are enough planes;
    # on 2-TC chips also try to give each core a step, but never drop LB below 128.
    if P >= 4 * 128:
        target_steps = 4
    elif two_cores and P >= 2 * 128:
        target_steps = 2
    else:
        target_steps = 1
    lb_target = max(128, (pl.cdiv(P, target_steps) // 128) * 128)

    LB = min(cap, lb_target)
    Ppad = _round_up(P, LB)
    NB = Ppad // LB
    return LB, Ppad, NB, vmem_limit


def _downsample_impl(x, *, taps, stride=2, padding=1):
    """x: (N, C, H, W).  taps: normalized 1-D Hanning taps (static tuple of 3 floats)."""
    assert len(taps) == 3 and stride == 2 and padding == 1, \
        "kernel is specialized to the 3x3 / stride-2 / pad-1 Downsample configuration"
    N, C, H, W = x.shape
    Ho = (H + 2 * padding - 3) // stride + 1
    Wo = (W + 2 * padding - 3) // stride + 1
    P = N * C

    itemsize = jnp.dtype(x.dtype).itemsize
    sub = max(8, 32 // itemsize)            # sublane-tile multiple for this dtype
    Wo_pad = _round_up(Wo, 8)               # output second-minor dim (f32-tile multiple)
    Wep = _round_up(Wo_pad + 1, sub)        # even-column slab width
    Wop = _round_up(Wo_pad, sub)            # odd-column  slab width

    # conservative per-lane VMEM footprint: up-to-3-deep input buffers, f32 temporaries
    # (squares + te/to + acc), double-buffered output.
    in_elems = (2 * Ho + 1) * (Wep + Wop)
    per_lane = (3 * in_elems * itemsize
                + (in_elems + 2 * Ho * (Wep + Wop) + Ho * Wo_pad) * 4
                + 2 * Ho * Wo_pad * itemsize)
    LB, Ppad, NB, vmem_limit = _plan(P, per_lane)

    # ---- build parity slabs directly from x (never materialize a padded xp) ----------
    # padded-plane coords: xp[r, c] = x[r-1, c-1] inside, 0 on the border.
    #   ee[m,k] = xp[2m,   2k  ]   eo[m,k] = xp[2m,   2k+1]
    #   oe[m,k] = xp[2m+1, 2k  ]   oo[m,k] = xp[2m+1, 2k+1]
    xP = x.reshape(P, H, W)

    def slab(r0, c0, rows_tgt, cols_tgt, pad_top, pad_left):
        s = xP[:, r0::2, c0::2]                                   # strided view of x
        pr = rows_tgt - pad_top - s.shape[1]
        pc = cols_tgt - pad_left - s.shape[2]
        s = jnp.pad(s, ((0, Ppad - P), (pad_top, pr), (pad_left, pc)))
        # planes onto the lane (minor) axis, blocked by LB
        return s.reshape(NB, LB, rows_tgt, cols_tgt).transpose(0, 2, 3, 1)

    ee = slab(1, 1, Ho + 1, Wep, 1, 1)      # (NB, Ho+1, Wep, LB)
    eo = slab(1, 0, Ho + 1, Wop, 1, 0)      # (NB, Ho+1, Wop, LB)
    oe = slab(0, 1, Ho,     Wep, 0, 1)      # (NB, Ho,   Wep, LB)
    oo = slab(0, 0, Ho,     Wop, 0, 0)      # (NB, Ho,   Wop, LB)

    # deeper input buffering only once the grid is long enough to pipeline
    buf_kw = {"pipeline_mode": pl.Buffered(3)} if NB >= 4 else {}

    def ispec(rows, cols):
        return pl.BlockSpec((1, rows, cols, LB), lambda b: (b, 0, 0, 0), **buf_kw)

    kern = partial(_downsample_kernel,
                   a0=float(taps[0]), a1=float(taps[1]), a2=float(taps[2]))

    cost = pl.CostEstimate(
        flops=23 * Ppad * Ho * Wo_pad,
        transcendentals=Ppad * Ho * Wo_pad,
        bytes_accessed=(in_elems * itemsize + Ho * Wo_pad * itemsize) * Ppad,
    )

    out = pl.pallas_call(
        kern,
        out_shape=jax.ShapeDtypeStruct((NB, Ho, Wo_pad, LB), x.dtype),
        grid=(NB,),
        in_specs=[
            ispec(Ho + 1, Wep),   # ee
            ispec(Ho + 1, Wop),   # eo
            ispec(Ho, Wep),       # oe
            ispec(Ho, Wop),       # oo
        ],
        out_specs=pl.BlockSpec((1, Ho, Wo_pad, LB), lambda b: (b, 0, 0, 0)),
        compiler_params=pltpu.CompilerParams(
            dimension_semantics=("parallel",),
            vmem_limit_bytes=vmem_limit,
        ),
        cost_estimate=cost,
    )(ee, eo, oe, oo)

    # (NB, Ho, Wo_pad, LB) -> (N, C, Ho, Wo); the slice fuses into the output transpose.
    out = out.transpose(0, 3, 1, 2).reshape(Ppad, Ho, Wo_pad)
    return out[:P, :, :Wo].reshape(N, C, Ho, Wo)


downsample = jax.jit(_downsample_impl, static_argnames=("taps", "stride", "padding"))


if __name__ == "__main__":
    key = jax.random.PRNGKey(0)
    N, C, H, W = 2, 4, 16, 16
    x = jax.random.normal(key, (N, C, H, W), dtype=jnp.float32)

    # deterministic filter, mirroring Downsample.__init__(filter_size=5, channels=C)
    filter_size = 5
    a = np.hanning(filter_size)[1:-1]            # [0.5, 1.0, 0.5]
    taps = tuple(float(v) for v in (a / a.sum()))  # normalized separable 1-D taps

    out = jax.block_until_ready(downsample(x, taps=taps))

    # pure-JAX reference (depthwise conv on the 2-D normalized Hanning kernel)
    g = a[:, None] * a[None, :]
    g = g / g.sum()
    filt = jnp.broadcast_to(jnp.asarray(g, jnp.float32)[None, None], (C, 1, 3, 3))
    ref = jax.lax.conv_general_dilated(
        x.astype(jnp.float32) ** 2,
        filt,
        window_strides=(2, 2),
        padding=((1, 1), (1, 1)),
        dimension_numbers=("NCHW", "OIHW", "NCHW"),
        feature_group_count=C,
    )
    ref = jnp.sqrt(ref + 1e-12)

    assert out.shape == (N, C, 8, 8), out.shape
    err = float(jnp.max(jnp.abs(out - ref)))
    assert err < 1e-5, err
    print("KERNEL_OK")
</pallas_src>

<mosaic_0001>
module attributes {stable_mosaic.version = 11 : i64} {
  func.func @_downsample_kernel(%arg0: i32, %arg1: memref<1x9x16x128xf32, #tpu.memory_space<vmem>>, %arg2: memref<1x9x8x128xf32, #tpu.memory_space<vmem>>, %arg3: memref<1x8x16x128xf32, #tpu.memory_space<vmem>>, %arg4: memref<1x8x8x128xf32, #tpu.memory_space<vmem>>, %arg5: memref<1x8x8x128xf32, #tpu.memory_space<vmem>>) attributes {dimension_semantics = [#tpu.dimension_semantics<parallel>], iteration_bounds = array<i64: 1>, scalar_prefetch = 0 : i64, scratch_operands = 0 : i64, tpu.core_type = #tpu.core_type<tc>, window_params = [{transform_indices = @transform_0, window_bounds = array<i64: 1, 9, 16, 128>}, {transform_indices = @transform_1, window_bounds = array<i64: 1, 9, 8, 128>}, {transform_indices = @transform_2, window_bounds = array<i64: 1, 8, 16, 128>}, {transform_indices = @transform_3, window_bounds = array<i64: 1, 8, 8, 128>}, {transform_indices = @transform_4, window_bounds = array<i64: 1, 8, 8, 128>}]} {
    %c0 = arith.constant 0 : index
    %c0_0 = arith.constant 0 : index
    %c0_1 = arith.constant 0 : index
    %c0_2 = arith.constant 0 : index
    %0 = vector.load %arg1[%c0, %c0_0, %c0_1, %c0_2] : memref<1x9x16x128xf32, #tpu.memory_space<vmem>>, vector<1x9x16x128xf32>
    %1 = vector.shape_cast %0 : vector<1x9x16x128xf32> to vector<9x16x128xf32>
    %2 = arith.mulf %1, %1 : vector<9x16x128xf32>
    %c0_3 = arith.constant 0 : index
    %c0_4 = arith.constant 0 : index
    %c0_5 = arith.constant 0 : index
    %c0_6 = arith.constant 0 : index
    %3 = vector.load %arg2[%c0_3, %c0_4, %c0_5, %c0_6] : memref<1x9x8x128xf32, #tpu.memory_space<vmem>>, vector<1x9x8x128xf32>
    %4 = vector.shape_cast %3 : vector<1x9x8x128xf32> to vector<9x8x128xf32>
    %5 = arith.mulf %4, %4 : vector<9x8x128xf32>
    %c0_7 = arith.constant 0 : index
    %c0_8 = arith.constant 0 : index
    %c0_9 = arith.constant 0 : index
    %c0_10 = arith.constant 0 : index
    %6 = vector.load %arg3[%c0_7, %c0_8, %c0_9, %c0_10] : memref<1x8x16x128xf32, #tpu.memory_space<vmem>>, vector<1x8x16x128xf32>
    %7 = vector.shape_cast %6 : vector<1x8x16x128xf32> to vector<8x16x128xf32>
    %8 = arith.mulf %7, %7 : vector<8x16x128xf32>
    %c0_11 = arith.constant 0 : index
    %c0_12 = arith.constant 0 : index
    %c0_13 = arith.constant 0 : index
    %c0_14 = arith.constant 0 : index
    %9 = vector.load %arg4[%c0_11, %c0_12, %c0_13, %c0_14] : memref<1x8x8x128xf32, #tpu.memory_space<vmem>>, vector<1x8x8x128xf32>
    %10 = vector.shape_cast %9 : vector<1x8x8x128xf32> to vector<8x8x128xf32>
    %11 = arith.mulf %10, %10 : vector<8x8x128xf32>
    %12 = vector.extract_strided_slice %2 {offsets = [0, 0, 0], sizes = [8, 16, 128], strides = [1, 1, 1]} : vector<9x16x128xf32> to vector<8x16x128xf32>
    %cst = arith.constant 2.500000e-01 : f32
    %13 = vector.broadcast %cst : f32 to vector<8x16x128xf32>
    %14 = arith.mulf %13, %12 : vector<8x16x128xf32>
    %cst_15 = arith.constant 5.000000e-01 : f32
    %15 = vector.broadcast %cst_15 : f32 to vector<8x16x128xf32>
    %16 = arith.mulf %15, %8 : vector<8x16x128xf32>
    %17 = arith.addf %14, %16 : vector<8x16x128xf32>
    %18 = vector.extract_strided_slice %2 {offsets = [1, 0, 0], sizes = [8, 16, 128], strides = [1, 1, 1]} : vector<9x16x128xf32> to vector<8x16x128xf32>
    %cst_16 = arith.constant 2.500000e-01 : f32
    %19 = vector.broadcast %cst_16 : f32 to vector<8x16x128xf32>
    %20 = arith.mulf %19, %18 : vector<8x16x128xf32>
    %21 = arith.addf %17, %20 : vector<8x16x128xf32>
    %22 = vector.extract_strided_slice %5 {offsets = [0, 0, 0], sizes = [8, 8, 128], strides = [1, 1, 1]} : vector<9x8x128xf32> to vector<8x8x128xf32>
    %cst_17 = arith.constant 2.500000e-01 : f32
    %23 = vector.broadcast %cst_17 : f32 to vector<8x8x128xf32>
    %24 = arith.mulf %23, %22 : vector<8x8x128xf32>
    %cst_18 = arith.constant 5.000000e-01 : f32
    %25 = vector.broadcast %cst_18 : f32 to vector<8x8x128xf32>
    %26 = arith.mulf %25, %11 : vector<8x8x128xf32>
    %27 = arith.addf %24, %26 : vector<8x8x128xf32>
    %28 = vector.extract_strided_slice %5 {offsets = [1, 0, 0], sizes = [8, 8, 128], strides = [1, 1, 1]} : vector<9x8x128xf32> to vector<8x8x128xf32>
    %cst_19 = arith.constant 2.500000e-01 : f32
    %29 = vector.broadcast %cst_19 : f32 to vector<8x8x128xf32>
    %30 = arith.mulf %29, %28 : vector<8x8x128xf32>
    %31 = arith.addf %27, %30 : vector<8x8x128xf32>
    %32 = vector.extract_strided_slice %21 {offsets = [0, 0, 0], sizes = [8, 8, 128], strides = [1, 1, 1]} : vector<8x16x128xf32> to vector<8x8x128xf32>
    %cst_20 = arith.constant 2.500000e-01 : f32
    %33 = vector.broadcast %cst_20 : f32 to vector<8x8x128xf32>
    %34 = arith.mulf %33, %32 : vector<8x8x128xf32>
    %cst_21 = arith.constant 5.000000e-01 : f32
    %35 = vector.broadcast %cst_21 : f32 to vector<8x8x128xf32>
    %36 = arith.mulf %35, %31 : vector<8x8x128xf32>
    %37 = arith.addf %34, %36 : vector<8x8x128xf32>
    %38 = vector.extract_strided_slice %21 {offsets = [0, 1, 0], sizes = [8, 8, 128], strides = [1, 1, 1]} : vector<8x16x128xf32> to vector<8x8x128xf32>
    %cst_22 = arith.constant 2.500000e-01 : f32
    %39 = vector.broadcast %cst_22 : f32 to vector<8x8x128xf32>
    %40 = arith.mulf %39, %38 : vector<8x8x128xf32>
    %41 = arith.addf %37, %40 : vector<8x8x128xf32>
    %cst_23 = arith.constant 9.99999996E-13 : f32
    %42 = vector.broadcast %cst_23 : f32 to vector<8x8x128xf32>
    %43 = arith.addf %41, %42 : vector<8x8x128xf32>
    %44 = math.sqrt %43 : vector<8x8x128xf32>
    %c0_24 = arith.constant 0 : index
    %c0_25 = arith.constant 0 : index
    %c0_26 = arith.constant 0 : index
    %c0_27 = arith.constant 0 : index
    %45 = vector.load %arg5[%c0_24, %c0_25, %c0_26, %c0_27] : memref<1x8x8x128xf32, #tpu.memory_space<vmem>>, vector<1x8x8x128xf32>
    %46 = vector.shape_cast %45 : vector<1x8x8x128xf32> to vector<8x8x128xf32>
    %47 = vector.shape_cast %44 : vector<8x8x128xf32> to vector<1x8x8x128xf32>
    tpu.vector_store %arg5[%c0_24, %c0_25, %c0_26, %c0_27], %47 {strides = array<i32>} : memref<1x8x8x128xf32, #tpu.memory_space<vmem>>, vector<1x8x8x128xf32>,
    return
  }
  func.func @transform_0(%arg0: i32) -> (i32, i32, i32, i32) {
    %c0_i32 = arith.constant 0 : i32
    %c0_i32_0 = arith.constant 0 : i32
    %c0_i32_1 = arith.constant 0 : i32
    %c0_i32_2 = arith.constant 0 : i32
    return %arg0, %c0_i32, %c0_i32_0, %c0_i32_1 : i32, i32, i32, i32
  }
  func.func @transform_1(%arg0: i32) -> (i32, i32, i32, i32) {
    %c0_i32 = arith.constant 0 : i32
    %c0_i32_0 = arith.constant 0 : i32
    %c0_i32_1 = arith.constant 0 : i32
    %c0_i32_2 = arith.constant 0 : i32
    return %arg0, %c0_i32, %c0_i32_0, %c0_i32_1 : i32, i32, i32, i32
  }
  func.func @transform_2(%arg0: i32) -> (i32, i32, i32, i32) {
    %c0_i32 = arith.constant 0 : i32
    %c0_i32_0 = arith.constant 0 : i32
    %c0_i32_1 = arith.constant 0 : i32
    %c0_i32_2 = arith.constant 0 : i32
    return %arg0, %c0_i32, %c0_i32_0, %c0_i32_1 : i32, i32, i32, i32
  }
  func.func @transform_3(%arg0: i32) -> (i32, i32, i32, i32) {
    %c0_i32 = arith.constant 0 : i32
    %c0_i32_0 = arith.constant 0 : i32
    %c0_i32_1 = arith.constant 0 : i32
    %c0_i32_2 = arith.constant 0 : i32
    return %arg0, %c0_i32, %c0_i32_0, %c0_i32_1 : i32, i32, i32, i32
  }
  func.func @transform_4(%arg0: i32) -> (i32, i32, i32, i32) {
    %c0_i32 = arith.constant 0 : i32
    %c0_i32_0 = arith.constant 0 : i32
    %c0_i32_1 = arith.constant 0 : i32
    %c0_i32_2 = arith.constant 0 : i32
    return %arg0, %c0_i32, %c0_i32_0, %c0_i32_1 : i32, i32, i32, i32
  }
}

</mosaic_0001>

<bundles_post_ra>
// kernel: _downsample_impl.1
= control target key start
LH: loop header
LB: loop body
LE: loop exit
PB: predicated region body
PF: predicated region fallthrough
CT: control target
= control target key end

     0   :  { %vm266_vm0 = vcmask 1046528   ;;  %s721_s0 = inlined_call_operand.vmem [shape: f32[1,9,16,128], index: 0, kind: input, shape index: {}]   ;;  %s722_s1 = inlined_call_operand.vmem [shape: f32[1,9,8,128], index: 1, kind: input, shape index: {}]   ;;  %s723_s2 = inlined_call_operand.vmem [shape: f32[1,8,16,128], index: 2, kind: input, shape index: {}]   ;;  %s724_s3 = inlined_call_operand.vmem [shape: f32[1,8,8,128], index: 3, kind: input, shape index: {}]   ;;  %s725_s4 = inlined_call_operand.vmem [shape: f32[1,8,8,128], index: 4, kind: output, shape index: {}]  }
   0x1   :  { %v17_v0 = vld [vmem:[%s721_s0] sm:$0xff]  ;;  %v18_v1 = vld [vmem:[%s721_s0 + $0x8] sm:$0xff]  ;;  %v19_v2 = vld [vmem:[%s721_s0 + $0x10] sm:$0xff] }
   0x2   :  { %v20_v3 = vld [vmem:[%s721_s0 + $0x18] sm:$0xff]  ;;  %v35_v4 = vmul.f32 %v17_v0, %v17_v0  ;;  %v36_v5 = vmul.f32 %v18_v1, %v18_v1  ;;  %v37_v6 = vmul.f32 %v19_v2, %v19_v2  ;;  %v53_v7 = vld [vmem:[%s722_s1] sm:$0xff]  ;;  %v54_v8 = vld [vmem:[%s722_s1 + $0x8] sm:$0xff] }
   0x3   :  { %v38_v9 = vmul.f32 %v20_v3, %v20_v3  ;;  %v62_v10 = vmul.f32 %v53_v7, %v53_v7  ;;  %v63_v11 = vmul.f32 %v54_v8, %v54_v8  ;;  %v71_v12 = vld [vmem:[%s723_s2] sm:$0xff]  ;;  %v72_v13 = vld [vmem:[%s723_s2 + $0x8] sm:$0xff]  ;;  %v73_v24 = vld [vmem:[%s723_s2 + $0x10] sm:$0xff] }
   0x4   :  { %v103_v14 = vld [vmem:[%s724_s3] sm:$0xff]  ;;  %v87_v15 = vmul.f32 %v71_v12, %v71_v12  ;;  %v88_v16 = vmul.f32 %v72_v13, %v72_v13  ;;  %v119_v18 = vmul.f32 0.25, %v35_v4  ;;  %v22_v20 = vld [vmem:[%s721_s0 + $0x28] sm:$0xff]  ;;  %v120_v21 = vmul.f32 0.25, %v36_v5  ;;  %v74_v25 = vld [vmem:[%s723_s2 + $0x18] sm:$0xff] }
   0x5   :  { %v111_v17 = vmul.f32 %v103_v14, %v103_v14  ;;  %v21_v19 = vld [vmem:[%s721_s0 + $0x20] sm:$0xff]  ;;  %v121_v22 = vmul.f32 0.25, %v37_v6  ;;  %v185_v23 = vmul.f32 0.25, %v62_v10  ;;  %v122_v26 = vmul.f32 0.25, %v38_v9  ;;  %v55_v30 = vld [vmem:[%s722_s1 + $0x10] sm:$0xff]  ;;  %v104_v31 = vld [vmem:[%s724_s3 + $0x8] sm:$0xff] }
   0x6   :  { %v135_v27 = vmul.f32 0.5, %v87_v15  ;;  %v136_v28 = vmul.f32 0.5, %v88_v16  ;;  %v186_v32 = vmul.f32 0.25, %v63_v11  ;;  %v39_v33 = vmul.f32 %v21_v19, %v21_v19  ;;  %v23_v47 = vld [vmem:[%s721_s0 + $0x30] sm:$0xff]  ;;  %v75_v56 = vld [vmem:[%s723_s2 + $0x20] sm:$0xff]  ;;  %v76_v57 = vld [vmem:[%s723_s2 + $0x28] sm:$0xff] }
   0x7   :  { %v193_v29 = vmul.f32 0.5, %v111_v17  ;;  %v40_v34 = vmul.f32 %v22_v20, %v22_v20  ;;  %v89_v35 = vmul.f32 %v73_v24, %v73_v24  ;;  %v90_v39 = vmul.f32 %v74_v25, %v74_v25  ;;  %v24_v61 = vld [vmem:[%s721_s0 + $0x38] sm:$0xff]  ;;  %v105_v63 = vld [vmem:[%s724_s3 + $0x10] sm:$0xff]  ;;  %v25_v20 = vld [vmem:[%s721_s0 + $0x40] sm:$0xff] }
   0x8   :  { %v151_v36 = vadd.f32 %v135_v27, %v119_v18  ;;  %v152_v37 = vadd.f32 %v136_v28, %v120_v21  ;;  %v64_v40 = vmul.f32 %v55_v30, %v55_v30  ;;  %v112_v41 = vmul.f32 %v104_v31, %v104_v31  ;;  %v56_v4 = vld [vmem:[%s722_s1 + $0x18] sm:$0xff]  ;;  %v26_v25 = vld [vmem:[%s721_s0 + $0x48] sm:$0xff]  ;;  %v77_v30 = vld [vmem:[%s723_s2 + $0x30] sm:$0xff] }
   0x9   :  { %v201_v38 = vadd.f32 %v193_v29, %v185_v23  ;;  %v137_v42 = vmul.f32 0.5, %v89_v35  ;;  %v138_v46 = vmul.f32 0.5, %v90_v39  ;;  %v123_v48 = vmul.f32 0.25, %v39_v33  ;;  %v78_v31 = vld [vmem:[%s723_s2 + $0x38] sm:$0xff] }
   0xa   :  { %v169_v43 = vadd.f32 %v151_v36, %v121_v22  ;;  %v170_v44 = vadd.f32 %v152_v37, %v122_v26  ;;  %v124_v49 = vmul.f32 0.25, %v40_v34  ;;  %v194_v51 = vmul.f32 0.5, %v112_v41 }
   0xb   :  { %v210_v45 = vadd.f32 %v201_v38, %v186_v32  ;;  %v153_v50 = vadd.f32 %v137_v42, %v121_v22  ;;  %v154_v55 = vadd.f32 %v138_v46, %v122_v26  ;;  %v187_v59 = vmul.f32 0.25, %v64_v40  ;;  %v57_v40 = vld [vmem:[%s722_s1 + $0x20] sm:$0xff] }
   0xc   :  { %v218_v52 = vmul.f32 0.25, %v169_v43  ;;  %v242_v54 = vmul.f32 0.25, %v170_v44  ;;  %v202_v60 = vadd.f32 %v194_v51, %v186_v32  ;;  %v41_v62 = vmul.f32 %v23_v47, %v23_v47  ;;  %v106_v32 = vld [vmem:[%s724_s3 + $0x18] sm:$0xff] }
   0xd   :  { %v226_v53 = vmul.f32 0.5, %v210_v45  ;;  %v171_v58 = vadd.f32 %v153_v50, %v123_v48  ;;  %v172_v3 = vadd.f32 %v154_v55, %v124_v49  ;;  %v91_v7 = vmul.f32 %v75_v56, %v75_v56 }
   0xe   :  { %v267_v1 = vrot.slane %v218_v52, 1  ;;  %v268_v2 = vrot.slane %v242_v54, 1  ;;  %v211_v5 = vadd.f32 %v202_v60, %v187_v59  ;;  %v92_v8 = vmul.f32 %v76_v57, %v76_v57 }
   0xf   :  { %v234_v0 = vadd.f32 %v226_v53, %v218_v52  ;;  %v219_v6 = vmul.f32 0.25, %v171_v58  ;;  %v243_v10 = vmul.f32 0.25, %v172_v3  ;;  %v42_v11 = vmul.f32 %v24_v61, %v24_v61  ;;  %v27_v61 = vld [vmem:[%s721_s0 + $0x50] sm:$0xff] }
  0x10   :  { %v269_v9 = vsel %vm266_vm0, %v267_v1, %v268_v2  ;;  %v113_v12 = vmul.f32 %v105_v63, %v105_v63  ;;  %v227_v14 = vmul.f32 0.5, %v211_v5  ;;  %v65_v16 = vmul.f32 %v56_v4, %v56_v4  ;;  %v79_v1 = vld [vmem:[%s723_s2 + $0x40] sm:$0xff] }
  0x11   :  { %v299_v13 = vadd.f32 %v269_v9, %v234_v0  ;;  %v270_v15 = vrot.slane %v219_v6, 1  ;;  %v271_v17 = vrot.slane %v243_v10, 1  ;;  %v139_v18 = vmul.f32 0.5, %v91_v7  ;;  %v107_v10 = vld [vmem:[%s724_s3 + $0x20] sm:$0xff] }
  0x12   :  { %v140_v19 = vmul.f32 0.5, %v92_v8  ;;  %v235_v22 = vadd.f32 %v227_v14, %v219_v6  ;;  %v125_v23 = vmul.f32 0.25, %v41_v62  ;;  %v195_v24 = vmul.f32 0.5, %v113_v12  ;;  %v80_v6 = vld [vmem:[%s723_s2 + $0x48] sm:$0xff] }
  0x13   :  { %v531_v21 = vadd.f32 1e-12, %v299_v13  ;;  %v272_v26 = vsel %vm266_vm0, %v270_v15, %v271_v17  ;;  %v126_v27 = vmul.f32 0.25, %v42_v11  ;;  %v155_v28 = vadd.f32 %v139_v18, %v123_v48  ;;  %v28_v15 = vld [vmem:[%s721_s0 + $0x58] sm:$0xff] }
  0x14   :  { %v156_v29 = vadd.f32 %v140_v19, %v124_v49  ;;  %v188_v33 = vmul.f32 0.25, %v65_v16  ;;  %v43_v34 = vmul.f32 %v25_v20, %v25_v20  ;;  %v300_v35 = vadd.f32 %v272_v26, %v235_v22  ;;  %v58_v20 = vld [vmem:[%s722_s1 + $0x28] sm:$0xff] }
  0x15   :  { %423 = vrsqrt.f32 %v531_v21  ;;  %v173_v36 = vadd.f32 %v155_v28, %v125_v23  ;;  %v203_v38 = vadd.f32 %v195_v24, %v187_v59  ;;  %v44_v39 = vmul.f32 %v26_v25, %v26_v25 }
  0x16   :  { %v174_v37 = vadd.f32 %v156_v29, %v126_v27  ;;  %v93_v41 = vmul.f32 %v77_v30, %v77_v30  ;;  %v94_v42 = vmul.f32 %v78_v31, %v78_v31  ;;  %v114_v43 = vmul.f32 %v106_v32, %v106_v32 }
  0x17   :  { %v550_v44 = vadd.f32 1e-12, %v300_v35  ;;  %v212_v45 = vadd.f32 %v203_v38, %v188_v33  ;;  %v220_v46 = vmul.f32 0.25, %v173_v36  ;;  %v66_v50 = vmul.f32 %v57_v40, %v57_v40 }
  0x18   :  { %v244_v47 = vmul.f32 0.25, %v174_v37  ;;  %v141_v48 = vmul.f32 0.5, %v93_v41  ;;  %v142_v49 = vmul.f32 0.5, %v94_v42  ;;  %v127_v51 = vmul.f32 0.25, %v43_v34 }
  0x19   :  { %425 = vrsqrt.f32 %v550_v44  ;;  %v228_v53 = vmul.f32 0.5, %v212_v45  ;;  %v273_v54 = vrot.slane %v220_v46, 1  ;;  %v128_v58 = vmul.f32 0.25, %v44_v39 }
  0x1a   :  { %v274_v55 = vrot.slane %v244_v47, 1  ;;  %v157_v56 = vadd.f32 %v141_v48, %v125_v23  ;;  %v158_v59 = vadd.f32 %v142_v49, %v126_v27  ;;  %v196_v60 = vmul.f32 0.5, %v114_v43 }
  0x1b   :  { %v424_v52 = vpop.eup %423  ;;  %vm322_vm1 = vcmp.eq.f32.partialorder %v531_v21, inf  ;;  %v236_v62 = vadd.f32 %v228_v53, %v220_v46  ;;  %v189_v4 = vmul.f32 0.25, %v66_v50  ;;  %vm324_vm2 = vcmp.eq.f32.partialorder %v531_v21, 0.0  ;;  %v29_v50 = vld [vmem:[%s721_s0 + $0x60] sm:$0xff] }
  0x1c   :  { %v316_v57 = vmul.f32 %v424_v52, %v531_v21  ;;  %v275_v63 = vsel %vm266_vm0, %v273_v54, %v274_v55  ;;  %v175_v0 = vadd.f32 %v157_v56, %v127_v51  ;;  %v176_v3 = vadd.f32 %v158_v59, %v128_v58  ;;  %v30_v56 = vld [vmem:[%s721_s0 + $0x68] sm:$0xff]  ;;  %v82_v59 = vld [vmem:[%s723_s2 + $0x58] sm:$0xff] }
  0x1d   :  { %v204_v5 = vadd.f32 %v196_v60, %v188_v33  ;;  %v301_v7 = vadd.f32 %v275_v63, %v236_v62  ;;  %v45_v9 = vmul.f32 %v27_v61, %v27_v61  ;;  %v95_v16 = vmul.f32 %v79_v1, %v79_v1 }
  0x1e   :  { %v317_v2 = vmul.f32 %v424_v52, %v316_v57  ;;  %v221_v8 = vmul.f32 0.25, %v175_v0  ;;  %v245_v14 = vmul.f32 0.25, %v176_v3  ;;  %v96_v22 = vmul.f32 %v80_v6, %v80_v6  ;;  %v81_v57 = vld [vmem:[%s723_s2 + $0x50] sm:$0xff]  ;;  %v108_v0 = vld [vmem:[%s724_s3 + $0x28] sm:$0xff] }
  0x1f   :  { %v426_v11 = vpop.eup %425  ;;  %v213_v13 = vadd.f32 %v204_v5, %v189_v4  ;;  %v573_v18 = vadd.f32 1e-12, %v301_v7  ;;  %v115_v26 = vmul.f32 %v107_v10, %v107_v10  ;;  %v325_v27 = vand.u32 2147483648, %v531_v21 }
  0x20   :  { %v318_v12 = vmul.f32 0.5, %v317_v2  ;;  %v328_v17 = vmul.f32 %v426_v11, %v550_v44  ;;  %v276_v19 = vrot.slane %v221_v8, 1  ;;  %v277_v25 = vrot.slane %v245_v14, 1 }
  0x21   :  { %v229_v24 = vmul.f32 0.5, %v213_v13  ;;  %427 = vrsqrt.f32 %v573_v18  ;;  %v46_v29 = vmul.f32 %v28_v15, %v28_v15  ;;  %v67_v33 = vmul.f32 %v58_v20, %v58_v20 }
  0x22   :  { %v319_v23 = vsub.f32 1.5, %v318_v12  ;;  %v329_v28 = vmul.f32 %v426_v11, %v328_v17  ;;  %v278_v32 = vsel %vm266_vm0, %v276_v19, %v277_v25  ;;  %vm334_vm3 = vcmp.eq.f32.partialorder %v550_v44, inf }
  0x23   :  { %v237_v31 = vadd.f32 %v229_v24, %v221_v8  ;;  %v143_v35 = vmul.f32 0.5, %v95_v16  ;;  %v144_v36 = vmul.f32 0.5, %v96_v22  ;;  %v129_v39 = vmul.f32 0.25, %v45_v9 }
  0x24   :  { %v320_v30 = vmul.f32 %v424_v52, %v319_v23  ;;  %v330_v34 = vmul.f32 0.5, %v329_v28  ;;  %v197_v40 = vmul.f32 0.5, %v115_v26  ;;  %v130_v42 = vmul.f32 0.25, %v46_v29  ;;  %v31_v28 = vld [vmem:[%s721_s0 + $0x70] sm:$0xff] }
  0x25   :  { %v302_v38 = vadd.f32 %v278_v32, %v237_v31  ;;  %v159_v43 = vadd.f32 %v143_v35, %v127_v51  ;;  %v160_v45 = vadd.f32 %v144_v36, %v128_v58  ;;  %v190_v48 = vmul.f32 0.25, %v67_v33  ;;  %v32_v32 = vld [vmem:[%s721_s0 + $0x78] sm:$0xff]  ;;  %v83_v33 = vld [vmem:[%s723_s2 + $0x60] sm:$0xff] }
  0x26   :  { %v321_v37 = vmul.f32 %v320_v30, %v531_v21  ;;  %v331_v41 = vsub.f32 1.5, %v330_v34  ;;  %v205_v49 = vadd.f32 %v197_v40, %v189_v4  ;;  %vm336_vm4 = vcmp.eq.f32.partialorder %v550_v44, 0.0  ;;  %v59_v4 = vld [vmem:[%s722_s1 + $0x30] sm:$0xff] }
  0x27   :  { %v586_v47 = vadd.f32 1e-12, %v302_v38  ;;  %v428_v52 = vpop.eup %427  ;;  %v177_v55 = vadd.f32 %v159_v43, %v129_v39  ;;  %v178_v51 = vadd.f32 %v160_v45, %v130_v42  ;;  %vm346_vm5 = vcmp.eq.f32.partialorder %v573_v18, inf  ;;  %v60_v38 = vld [vmem:[%s722_s1 + $0x38] sm:$0xff]  ;;  %v84_v43 = vld [vmem:[%s723_s2 + $0x68] sm:$0xff] }
  0x28   :  { %v323_v46 = vsel %vm322_vm1, %v531_v21, %v321_v37  ;;  %v332_v54 = vmul.f32 %v426_v11, %v331_v41  ;;  %v337_v21 = vand.u32 2147483648, %v550_v44  ;;  %v340_v58 = vmul.f32 %v428_v52, %v573_v18 }
  0x29   :  { %v326_v53 = vsel %vm324_vm2, %v325_v27, %v323_v46  ;;  %429 = vrsqrt.f32 %v586_v47  ;;  %v214_v61 = vadd.f32 %v205_v49, %v190_v48  ;;  %v222_v62 = vmul.f32 0.25, %v177_v55 }
  0x2a   :  { %411 = vst [vmem:[%s725_s4] sm:$0xff] %v326_v53  ;;  %v333_v60 = vmul.f32 %v332_v54, %v550_v44  ;;  %v47_v63 = vmul.f32 %v29_v50, %v29_v50  ;;  %v341_v1 = vmul.f32 %v428_v52, %v340_v58  ;;  %vm348_vm6 = vcmp.eq.f32.partialorder %v573_v18, 0.0 }
  0x2b   :  { %v246_v2 = vmul.f32 0.25, %v178_v51  ;;  %v48_v3 = vmul.f32 %v30_v56, %v30_v56  ;;  %v97_v5 = vmul.f32 %v81_v57, %v81_v57  ;;  %v230_v7 = vmul.f32 0.5, %v214_v61 }
  0x2c   :  { %v335_v6 = vsel %vm334_vm3, %v550_v44, %v333_v60  ;;  %v279_v8 = vrot.slane %v222_v62, 1  ;;  %v98_v9 = vmul.f32 %v82_v59, %v82_v59  ;;  %v342_v11 = vmul.f32 0.5, %v341_v1 }
  0x2d   :  { %v338_v10 = vsel %vm336_vm4, %v337_v21, %v335_v6  ;;  %v280_v12 = vrot.slane %v246_v2, 1  ;;  %v116_v13 = vmul.f32 %v108_v0, %v108_v0  ;;  %v349_v14 = vand.u32 2147483648, %v573_v18 }
  0x2e   :  { %412 = vst [vmem:[%s725_s4 + $0x8] sm:$0xff] %v338_v10  ;;  %v238_v15 = vadd.f32 %v230_v7, %v222_v62  ;;  %v68_v16 = vmul.f32 %v59_v4, %v59_v4  ;;  %v145_v17 = vmul.f32 0.5, %v97_v5  ;;  %v343_v20 = vsub.f32 1.5, %v342_v11  ;;  %v33_v4 = vld [vmem:[%s721_s0 + $0x80] sm:$0xff]  ;;  %v34_v5 = vld [vmem:[%s721_s0 + $0x88] sm:$0xff] }
  0x2f   :  { %v430_v19 = vpop.eup %429  ;;  %v281_v22 = vsel %vm266_vm0, %v279_v8, %v280_v12  ;;  %v131_v23 = vmul.f32 0.25, %v47_v63  ;;  %v146_v24 = vmul.f32 0.5, %v98_v9  ;;  %v198_v27 = vmul.f32 0.5, %v116_v13 }
  0x30   :  { %v352_v44 = vmul.f32 %v430_v19, %v586_v47  ;;  %v303_v25 = vadd.f32 %v281_v22, %v238_v15  ;;  %v161_v26 = vadd.f32 %v145_v17, %v129_v39  ;;  %v344_v29 = vmul.f32 %v428_v52, %v343_v20  ;;  %v85_v15 = vld [vmem:[%s723_s2 + $0x70] sm:$0xff] }
  0x31   :  { %vm358_vm7 = vcmp.eq.f32.partialorder %v586_v47, inf  ;;  %v132_v30 = vmul.f32 0.25, %v48_v3  ;;  %v162_v31 = vadd.f32 %v146_v24, %v130_v42  ;;  %vm360_vm8 = vcmp.eq.f32.partialorder %v586_v47, 0.0 }
  0x32   :  { %v353_v34 = vmul.f32 %v430_v19, %v352_v44  ;;  %v640_v35 = vadd.f32 1e-12, %v303_v25  ;;  %v179_v36 = vadd.f32 %v161_v26, %v131_v23  ;;  %v206_v37 = vadd.f32 %v198_v27, %v190_v48  ;;  %v109_v48 = vld [vmem:[%s724_s3 + $0x30] sm:$0xff]  ;;  %v61_v26 = vld [vmem:[%s722_s1 + $0x40] sm:$0xff] }
  0x33   :  { %v345_v39 = vmul.f32 %v344_v29, %v573_v18  ;;  %v180_v40 = vadd.f32 %v162_v31, %v132_v30  ;;  %v191_v41 = vmul.f32 0.25, %v68_v16  ;;  %v49_v42 = vmul.f32 %v31_v28, %v31_v28  ;;  %v86_v16 = vld [vmem:[%s723_s2 + $0x78] sm:$0xff] }
  0x34   :  { %v354_v45 = vmul.f32 0.5, %v353_v34  ;;  %431 = vrsqrt.f32 %v640_v35  ;;  %v50_v46 = vmul.f32 %v32_v32, %v32_v32  ;;  %v99_v49 = vmul.f32 %v83_v33, %v83_v33 }
  0x35   :  { %v347_v50 = vsel %vm346_vm5, %v573_v18, %v345_v39  ;;  %v215_v52 = vadd.f32 %v206_v37, %v191_v41  ;;  %v223_v53 = vmul.f32 0.25, %v179_v36  ;;  %v69_v54 = vmul.f32 %v60_v38, %v60_v38 }
  0x36   :  { %v350_v55 = vsel %vm348_vm6, %v349_v14, %v347_v50  ;;  %v355_v51 = vsub.f32 1.5, %v354_v45  ;;  %v247_v56 = vmul.f32 0.25, %v180_v40  ;;  %v100_v57 = vmul.f32 %v84_v43, %v84_v43 }
  0x37   :  { %413 = vst [vmem:[%s725_s4 + $0x10] sm:$0xff] %v350_v55  ;;  %v361_v21 = vand.u32 2147483648, %v586_v47  ;;  %v231_v58 = vmul.f32 0.5, %v215_v52  ;;  %v282_v59 = vrot.slane %v223_v53, 1  ;;  %v117_v60 = vmul.f32 %v109_v48, %v109_v48 }
  0x38   :  { %v356_v61 = vmul.f32 %v430_v19, %v355_v51  ;;  %v283_v62 = vrot.slane %v247_v56, 1  ;;  %v133_v63 = vmul.f32 0.25, %v49_v42  ;;  %v147_v0 = vmul.f32 0.5, %v99_v49 }
  0x39   :  { %v239_v1 = vadd.f32 %v231_v58, %v223_v53  ;;  %v134_v2 = vmul.f32 0.25, %v50_v46  ;;  %v148_v18 = vmul.f32 0.5, %v100_v57  ;;  %v199_v3 = vmul.f32 0.5, %v117_v60 }
  0x3a   :  { %v432_v6 = vpop.eup %431  ;;  %v357_v7 = vmul.f32 %v356_v61, %v586_v47  ;;  %v284_v8 = vsel %vm266_vm0, %v282_v59, %v283_v62  ;;  %v163_v9 = vadd.f32 %v147_v0, %v131_v23  ;;  %v192_v10 = vmul.f32 0.25, %v69_v54 }
  0x3b   :  { %v364_v11 = vmul.f32 %v432_v6, %v640_v35  ;;  %v304_v12 = vadd.f32 %v284_v8, %v239_v1  ;;  %v164_v13 = vadd.f32 %v148_v18, %v132_v30  ;;  %v207_v14 = vadd.f32 %v199_v3, %v191_v41 }
  0x3c   :  { %v359_v17 = vsel %vm358_vm7, %v586_v47, %v357_v7  ;;  %v181_v19 = vadd.f32 %v163_v9, %v133_v63  ;;  %v51_v20 = vmul.f32 %v33_v4, %v33_v4  ;;  %v52_v22 = vmul.f32 %v34_v5, %v34_v5  ;;  %v110_v47 = vld [vmem:[%s724_s3 + $0x38] sm:$0xff] }
  0x3d   :  { %v362_v23 = vsel %vm360_vm8, %v361_v21, %v359_v17  ;;  %v365_v24 = vmul.f32 %v432_v6, %v364_v11  ;;  %v682_v44 = vadd.f32 1e-12, %v304_v12  ;;  %v182_v25 = vadd.f32 %v164_v13, %v134_v2 }
  0x3e   :  { %414 = vst [vmem:[%s725_s4 + $0x18] sm:$0xff] %v362_v23  ;;  %v216_v27 = vadd.f32 %v207_v14, %v192_v10  ;;  %v224_v28 = vmul.f32 0.25, %v181_v19  ;;  %v101_v29 = vmul.f32 %v85_v15, %v85_v15  ;;  %v102_v30 = vmul.f32 %v86_v16, %v86_v16 }
  0x3f   :  { %v366_v31 = vmul.f32 0.5, %v365_v24  ;;  %vm370_vm9 = vcmp.eq.f32.partialorder %v640_v35, inf  ;;  %433 = vrsqrt.f32 %v682_v44  ;;  %v248_v33 = vmul.f32 0.25, %v182_v25 }
  0x40   :  { %v232_v32 = vmul.f32 0.5, %v216_v27  ;;  %v285_v34 = vrot.slane %v224_v28, 1  ;;  %v70_v36 = vmul.f32 %v61_v26, %v61_v26  ;;  %v118_v38 = vmul.f32 %v110_v47, %v110_v47 }
  0x41   :  { %v367_v37 = vsub.f32 1.5, %v366_v31  ;;  %v149_v39 = vmul.f32 0.5, %v101_v29  ;;  %v150_v40 = vmul.f32 0.5, %v102_v30  ;;  %v286_v42 = vrot.slane %v248_v33, 1 }
  0x42   :  { %v240_v41 = vadd.f32 %v232_v32, %v224_v28  ;;  %v167_v43 = vmul.f32 0.25, %v51_v20  ;;  %v168_v45 = vmul.f32 0.25, %v52_v22  ;;  %v200_v50 = vmul.f32 0.5, %v118_v38 }
  0x43   :  { %v368_v46 = vmul.f32 %v432_v6, %v367_v37  ;;  %v165_v49 = vadd.f32 %v149_v39, %v133_v63  ;;  %v166_v48 = vadd.f32 %v150_v40, %v134_v2  ;;  %vm372_vm10 = vcmp.eq.f32.partialorder %v640_v35, 0.0 }
  0x44   :  { %v373_v52 = vand.u32 2147483648, %v640_v35  ;;  %v287_v53 = vsel %vm266_vm0, %v285_v34, %v286_v42  ;;  %v209_v54 = vmul.f32 0.25, %v70_v36  ;;  %v208_v59 = vadd.f32 %v200_v50, %v192_v10 }
  0x45   :  { %v434_v55 = vpop.eup %433  ;;  %v369_v51 = vmul.f32 %v368_v46, %v640_v35  ;;  %v305_v56 = vadd.f32 %v287_v53, %v240_v41  ;;  %v183_v57 = vadd.f32 %v167_v43, %v165_v49  ;;  %v184_v21 = vadd.f32 %v168_v45, %v166_v48 }
  0x46   :  { %v376_v58 = vmul.f32 %v434_v55, %v682_v44  ;;  %v217_v2 = vadd.f32 %v209_v54, %v208_v59  ;;  %vm382_vm11 = vcmp.eq.f32.partialorder %v682_v44, inf  ;;  %v385_v11 = vand.u32 2147483648, %v682_v44 }
  0x47   :  { %v371_v60 = vsel %vm370_vm9, %v640_v35, %v369_v51  ;;  %v313_v61 = vadd.f32 1e-12, %v305_v56  ;;  %v225_v62 = vmul.f32 0.25, %v183_v57  ;;  %v249_v63 = vmul.f32 0.25, %v184_v21 }
  0x48   :  { %v374_v0 = vsel %vm372_vm10, %v373_v52, %v371_v60  ;;  %v377_v1 = vmul.f32 %v434_v55, %v376_v58  ;;  %v233_v3 = vmul.f32 0.5, %v217_v2  ;;  %vm384_vm12 = vcmp.eq.f32.partialorder %v682_v44, 0.0 }
  0x49   :  { %415 = vst [vmem:[%s725_s4 + $0x20] sm:$0xff] %v374_v0  ;;  %435 = vrsqrt.f32 %v313_v61  ;;  %v288_v4 = vrot.slane %v225_v62, 1  ;;  %v289_v5 = vrot.slane %v249_v63, 1  ;;  %vm394_vm13 = vcmp.eq.f32.partialorder %v313_v61, inf }
  0x4a   :  { %v378_v18 = vmul.f32 0.5, %v377_v1  ;;  %v241_v7 = vadd.f32 %v233_v3, %v225_v62  ;;  %v397_v24 = vand.u32 2147483648, %v313_v61  ;;  %vm396_vm14 = vcmp.eq.f32.partialorder %v313_v61, 0.0 }
  0x4b   :  { %v290_v8 = vsel %vm266_vm0, %v288_v4, %v289_v5 }
  0x4c   :  { %v379_v6 = vsub.f32 1.5, %v378_v18  ;;  %v306_v9 = vadd.f32 %v290_v8, %v241_v7 }
  0x4e   :  { %v380_v35 = vmul.f32 %v434_v55, %v379_v6  ;;  %v314_v14 = vadd.f32 1e-12, %v306_v9 }
  0x4f   :  { %v436_v10 = vpop.eup %435 }
  0x50   :  { %v381_v12 = vmul.f32 %v380_v35, %v682_v44  ;;  %v388_v13 = vmul.f32 %v436_v10, %v313_v61  ;;  %437 = vrsqrt.f32 %v314_v14  ;;  %vm406_vm15 = vcmp.eq.f32.partialorder %v314_v14, inf }
  0x51   :  { %v409_v31 = vand.u32 2147483648, %v314_v14  ;;  %vm408_vm0 = vcmp.eq.f32.partialorder %v314_v14, 0.0 }
  0x52   :  { %v383_v15 = vsel %vm382_vm11, %v682_v44, %v381_v12  ;;  %v389_v16 = vmul.f32 %v436_v10, %v388_v13 }
  0x53   :  { %v386_v17 = vsel %vm384_vm12, %v385_v11, %v383_v15 }
  0x54   :  { %416 = vst [vmem:[%s725_s4 + $0x28] sm:$0xff] %v386_v17  ;;  %v390_v19 = vmul.f32 0.5, %v389_v16 }
  0x56   :  { %v391_v20 = vsub.f32 1.5, %v390_v19  ;;  %v438_v22 = vpop.eup %437 }
  0x57   :  { %v400_v25 = vmul.f32 %v438_v22, %v314_v14 }
  0x58   :  { %v392_v23 = vmul.f32 %v436_v10, %v391_v20 }
  0x59   :  { %v401_v27 = vmul.f32 %v438_v22, %v400_v25 }
  0x5a   :  { %v393_v26 = vmul.f32 %v392_v23, %v313_v61 }
  0x5b   :  { %v402_v44 = vmul.f32 0.5, %v401_v27 }
  0x5c   :  { %v395_v28 = vsel %vm394_vm13, %v313_v61, %v393_v26 }
  0x5d   :  { %v398_v29 = vsel %vm396_vm14, %v397_v24, %v395_v28  ;;  %v403_v30 = vsub.f32 1.5, %v402_v44 }
  0x5e   :  { %417 = vst [vmem:[%s725_s4 + $0x30] sm:$0xff] %v398_v29 }
  0x5f   :  { %v404_v47 = vmul.f32 %v438_v22, %v403_v30 }
  0x61   :  { %v405_v32 = vmul.f32 %v404_v47, %v314_v14 }
  0x63   :  { %v407_v33 = vsel %vm406_vm15, %v314_v14, %v405_v32 }
  0x64   :  { %v410_v34 = vsel %vm408_vm0, %v409_v31, %v407_v33 }
  0x65   :  { %418 = vst [vmem:[%s725_s4 + $0x38] sm:$0xff] %v410_v34 }

</bundles_post_ra>
